<compile_context>
chip_gen: v5e
topology: v5e:2x2
jax: 0.10.0
libtpu: 0.0.40
codegen_flags: <defaults>
</compile_context>

<pallas_src>
import functools

import jax
import jax.numpy as jnp
from jax.experimental import pallas as pl
from jax.experimental.pallas import tpu as pltpu

_LANE = 128
_MAX_UNROLL = 8                          # images unrolled per grid step (cap)
_VMEM_BLOCK_BUDGET = 40 * 1024 * 1024    # block-sizing budget (fits v7x 64 MiB/TC)
_VMEM_LIMIT_BYTES = 48 * 1024 * 1024     # scoped VMEM limit (defaults 16/32/32 MiB)

# masked-'B' 3x3 taps in (kernel_row, kernel_col) order.
_MASK_B_TAPS = ((0, 0), (0, 1), (0, 2), (1, 0), (1, 1))


def _round_up(v, m):
    return (v + m - 1) // m * m


def _nbytes(a):
    return a.size * jnp.dtype(a.dtype).itemsize


def _resblock_kernel(x_ref, masks_ref, w1_ref, b1_ref, w2_ref, b2_ref,
                     w3_ref, b3_ref, o_ref, *, width, block_batch, mm_dtype):
    """block_batch images per grid step; each image is channel-major (C, HWp).

    x_ref : (B_blk, Cin, HWp) f32      masks_ref: (4, HWp) f32 (hoisted)
    w1_ref: (Chp, Cin)  mm   b1_ref: (Chp, 1) f32
    w2_ref: (5, Chp, Chp) mm b2_ref: (Chp, 1) f32
    w3_ref: (Cin, Chp)  mm   b3_ref: (Cin, 1) f32
    o_ref : (B_blk, Cin, HWp) f32
    """
    w = width
    # tap -> (lane shift, boundary-mask row).  Offsets are (dy,dx) relative to
    # the output pixel: shift s means "read flat position p - s".
    taps = ((w + 1, 0),    # (0,0): dy=-1, dx=-1 -> not_top & not_left
            (w, 1),        # (0,1): dy=-1, dx= 0 -> not_top
            (w - 1, 2),    # (0,2): dy=-1, dx=+1 -> not_top & not_right
            (1, 3),        # (1,0): dy= 0, dx=-1 -> not_left
            (0, None))     # (1,1): center       -> no mask

    masks = masks_ref[...]                       # (4, HWp) f32, loaded once

    for b in range(block_batch):                 # static unroll; no extra grid overhead
        x = x_ref[b]                             # (Cin, HWp) f32

        # ---- conv1: 1x1 + ReLU (MXU, f32 accumulation) ----
        y1 = jnp.dot(w1_ref[...], x.astype(mm_dtype),
                     preferred_element_type=jnp.float32)
        y1 = jnp.maximum(y1 + b1_ref[...], 0.0)                  # (Chp, HWp) f32
        center = y1.astype(mm_dtype)

        # ---- conv2: masked 3x3 'B' (padding=1) + ReLU ----
        # Five lane-rolled taps (XLU rolls are off the VALU/vst critical path);
        # the five K=Chp dots are accumulated directly — no concatenated
        # (5*Chp, HWp) activation is ever written to / read from VMEM.
        acc = None
        for slot, (shift, mrow) in enumerate(taps):
            if shift == 0:
                t = center
            else:
                t = (pltpu.roll(y1, shift, axis=1)
                     * masks[mrow:mrow + 1, :]).astype(mm_dtype)
            part = jnp.dot(w2_ref[slot], t, preferred_element_type=jnp.float32)
            acc = part if acc is None else acc + part
        y2 = jnp.maximum(acc + b2_ref[...], 0.0)                 # (Chp, HWp) f32

        # ---- conv3: 1x1 + ReLU ----
        y3 = jnp.dot(w3_ref[...], y2.astype(mm_dtype),
                     preferred_element_type=jnp.float32)
        y3 = jnp.maximum(y3 + b3_ref[...], 0.0)                  # (Cin, HWp) f32

        # ---- residual add; lane-dense store (HWp is a multiple of 128) ----
        o_ref[b] = (x + y3).astype(o_ref.dtype)


@functools.partial(jax.jit, static_argnames=("matmul_dtype",))
def residual_block(x, w1, b1, w2, b2, w3, b3, *, matmul_dtype=jnp.bfloat16):
    """ResidualBlock forward.

    x : (N, Cin, H, W) float32 (PyTorch NCHW layout).
    w1: (Ch, Cin, 1, 1)  b1: (Ch,)   -- conv1 (1x1)
    w2: (Ch, Ch, 3, 3)   b2: (Ch,)   -- masked conv2 ('B', padding=1)
    w3: (Cin, Ch, 1, 1)  b3: (Cin,)  -- conv3 (1x1)
    matmul_dtype: MXU operand dtype (bf16 = performance path, f32 = exact).
    Returns (N, Cin, H, W) float32.
    """
    N, Cin, H, W = x.shape
    Ch = w1.shape[0]
    HW = H * W
    HWp = _round_up(HW, _LANE)               # lane-dense stores need %128 == 0
    mm_dtype = jnp.dtype(matmul_dtype)
    pad_mult = 16 if mm_dtype == jnp.bfloat16 else 8
    Chp = _round_up(Ch, pad_mult)            # hidden channels, sublane/pack aligned

    f32 = jnp.float32

    # ---- mask type 'B' applied to the 3x3 weights (as PyTorch does) ----
    mask3 = jnp.array([[1.0, 1.0, 1.0],
                       [1.0, 1.0, 0.0],
                       [0.0, 0.0, 0.0]], w2.dtype)
    w2m = w2 * mask3

    # ---- weight prep (once, in the wrapper; hidden dim zero-padded) ----
    po = (0, Chp - Ch)
    w1m = jnp.pad(w1[:, :, 0, 0], (po, (0, 0))).astype(mm_dtype)       # (Chp, Cin)
    b1m = jnp.pad(b1, po)[:, None].astype(f32)                         # (Chp, 1)
    w2s = jnp.stack([w2m[:, :, ky, kx] for ky, kx in _MASK_B_TAPS], 0)  # (5, Ch, Ch)
    w2s = jnp.pad(w2s, ((0, 0), po, po)).astype(mm_dtype)              # (5, Chp, Chp)
    b2m = jnp.pad(b2, po)[:, None].astype(f32)                         # (Chp, 1)
    w3m = jnp.pad(w3[:, :, 0, 0], ((0, 0), po)).astype(mm_dtype)       # (Cin, Chp)
    b3m = b3[:, None].astype(f32)                                      # (Cin, 1)

    # ---- boundary masks, hoisted out of the kernel (computed once) ----
    pos = jnp.arange(HWp, dtype=jnp.int32)
    col = pos % W
    not_top = pos >= W
    not_left = col >= 1
    not_right = col <= W - 2
    masks = jnp.stack([not_top & not_left,        # tap (0,0)
                       not_top,                   # tap (0,1)
                       not_top & not_right,       # tap (0,2)
                       not_left], 0).astype(f32)  # tap (1,0)   -> (4, HWp)

    # ---- NCHW -> (N, Cin, H*W): pure reshape; pad lanes to 128 multiple ----
    xf = x.reshape(N, Cin, HW)
    if HWp != HW:
        xf = jnp.pad(xf, ((0, 0), (0, 0), (0, HWp - HW)))

    # ---- pick images-per-step from a v7x-safe VMEM budget; keep >= 2 grid
    #      steps so both v7x TensorCores get work (no-op on 1-TC v5e/v6e) ----
    weight_bytes = 2 * (_nbytes(w1m) + _nbytes(w2s) + _nbytes(w3m)
                        + _nbytes(b1m) + _nbytes(b2m) + _nbytes(b3m)
                        + _nbytes(masks))

    def vmem_est(b):
        act = b * HWp * (2 * Cin * 4          # input block, double-buffered
                         + 2 * Cin * 4        # output block, double-buffered
                         + 3 * Chp * 4        # y1 / tap accumulator / y2 (f32)
                         + 2 * Chp * mm_dtype.itemsize)  # mm-dtype operands in flight
        return act + weight_bytes

    divisors = [b for b in range(1, N + 1)
                if N % b == 0 and b <= _MAX_UNROLL
                and vmem_est(b) <= _VMEM_BLOCK_BUDGET]
    multi_step = [b for b in divisors if N // b >= 2]
    B_blk = max(multi_step or divisors or [1])

    flops = 2 * (Cin * Chp + 5 * Chp * Chp + Chp * Cin) * HW * N
    bytes_accessed = 2 * _nbytes(x) + weight_bytes // 2 + _nbytes(masks)

    full = lambda a: pl.BlockSpec(a.shape, lambda n: (0,) * a.ndim)

    out = pl.pallas_call(
        functools.partial(_resblock_kernel, width=W, block_batch=B_blk,
                          mm_dtype=mm_dtype),
        out_shape=jax.ShapeDtypeStruct((N, Cin, HWp), x.dtype),
        grid_spec=pltpu.PrefetchScalarGridSpec(
            num_scalar_prefetch=0,
            grid=(N // B_blk,),
            in_specs=[
                pl.BlockSpec((B_blk, Cin, HWp), lambda n: (n, 0, 0)),
                full(masks), full(w1m), full(b1m), full(w2s), full(b2m),
                full(w3m), full(b3m),
            ],
            out_specs=pl.BlockSpec((B_blk, Cin, HWp), lambda n: (n, 0, 0)),
        ),
        compiler_params=pltpu.CompilerParams(
            dimension_semantics=("parallel",),
            vmem_limit_bytes=_VMEM_LIMIT_BYTES),
        cost_estimate=pl.CostEstimate(flops=flops, transcendentals=0,
                                      bytes_accessed=bytes_accessed),
    )(xf, masks, w1m, b1m, w2s, b2m, w3m, b3m)

    if HWp != HW:
        out = out[:, :, :HW]
    return out.reshape(N, Cin, H, W)


def _reference(x, w1, b1, w2_masked, b2, w3, b3):
    """Pure-JAX reference using lax convs (NCHW / OIHW)."""
    dn = ("NCHW", "OIHW", "NCHW")
    hp = jax.lax.Precision.HIGHEST
    y = jax.lax.conv_general_dilated(x, w1, (1, 1), "VALID",
                                     dimension_numbers=dn, precision=hp)
    y = jax.nn.relu(y + b1[None, :, None, None])
    y = jax.lax.conv_general_dilated(y, w2_masked, (1, 1), "SAME",
                                     dimension_numbers=dn, precision=hp)
    y = jax.nn.relu(y + b2[None, :, None, None])
    y = jax.lax.conv_general_dilated(y, w3, (1, 1), "VALID",
                                     dimension_numbers=dn, precision=hp)
    y = jax.nn.relu(y + b3[None, :, None, None])
    return x + y


if __name__ == "__main__":
    N, Cin, H, W = 4, 8, 16, 16          # small; exercises B_blk=2, grid of 2
    Ch = Cin // 2

    key = jax.random.PRNGKey(0)
    kx_, k1, kb1, k2, kb2, k3, kb3 = jax.random.split(key, 7)

    x = jax.random.normal(kx_, (N, Cin, H, W), jnp.float32)          # NCHW

    # Parameters in PyTorch Conv2d layout.
    w1 = jax.random.normal(k1, (Ch, Cin, 1, 1), jnp.float32) * 0.2
    b1 = jax.random.normal(kb1, (Ch,), jnp.float32) * 0.1
    w2 = jax.random.normal(k2, (Ch, Ch, 3, 3), jnp.float32) * 0.2
    b2 = jax.random.normal(kb2, (Ch,), jnp.float32) * 0.1
    w3 = jax.random.normal(k3, (Cin, Ch, 1, 1), jnp.float32) * 0.2
    b3 = jax.random.normal(kb3, (Cin,), jnp.float32) * 0.1

    mask3 = jnp.array([[1.0, 1.0, 1.0],
                       [1.0, 1.0, 0.0],
                       [0.0, 0.0, 0.0]], jnp.float32)
    ref = _reference(x, w1, b1, w2 * mask3, b2, w3, b3)

    # Exact path (f32 matmul operands): tight check of the tap/mask construction.
    out_f32 = jax.block_until_ready(
        residual_block(x, w1, b1, w2, b2, w3, b3, matmul_dtype=jnp.float32))
    assert out_f32.shape == (N, Cin, H, W)
    err_f32 = float(jnp.max(jnp.abs(out_f32 - ref)))
    assert jnp.allclose(out_f32, ref, atol=1e-3, rtol=1e-3), err_f32

    # Performance path (bf16 MXU operands, f32 accumulation): looser check.
    out_bf16 = jax.block_until_ready(
        residual_block(x, w1, b1, w2, b2, w3, b3, matmul_dtype=jnp.bfloat16))
    assert out_bf16.shape == (N, Cin, H, W)
    err_bf16 = float(jnp.max(jnp.abs(out_bf16 - ref)))
    assert jnp.allclose(out_bf16, ref, atol=1.5e-1, rtol=1e-1), err_bf16

    print("KERNEL_OK")
</pallas_src>

<mosaic_0001>
module attributes {stable_mosaic.version = 11 : i64} {
  func.func @_resblock_kernel(%arg0: i32, %arg1: memref<2x8x256xf32, #tpu.memory_space<vmem>>, %arg2: memref<4x256xf32, #tpu.memory_space<vmem>>, %arg3: memref<8x8xf32, #tpu.memory_space<vmem>>, %arg4: memref<8x1xf32, #tpu.memory_space<vmem>>, %arg5: memref<5x8x8xf32, #tpu.memory_space<vmem>>, %arg6: memref<8x1xf32, #tpu.memory_space<vmem>>, %arg7: memref<8x8xf32, #tpu.memory_space<vmem>>, %arg8: memref<8x1xf32, #tpu.memory_space<vmem>>, %arg9: memref<2x8x256xf32, #tpu.memory_space<vmem>>) attributes {dimension_semantics = [#tpu.dimension_semantics<parallel>], iteration_bounds = array<i64: 2>, scalar_prefetch = 0 : i64, scratch_operands = 0 : i64, tpu.core_type = #tpu.core_type<tc>, window_params = [{transform_indices = @transform_0, window_bounds = array<i64: 2, 8, 256>}, {pipeline_mode = #tpu.pipeline_mode<synchronous>, transform_indices = @transform_1, window_bounds = array<i64: 4, 256>}, {pipeline_mode = #tpu.pipeline_mode<synchronous>, transform_indices = @transform_2, window_bounds = array<i64: 8, 8>}, {pipeline_mode = #tpu.pipeline_mode<synchronous>, transform_indices = @transform_3, window_bounds = array<i64: 8, 1>}, {pipeline_mode = #tpu.pipeline_mode<synchronous>, transform_indices = @transform_4, window_bounds = array<i64: 5, 8, 8>}, {pipeline_mode = #tpu.pipeline_mode<synchronous>, transform_indices = @transform_5, window_bounds = array<i64: 8, 1>}, {pipeline_mode = #tpu.pipeline_mode<synchronous>, transform_indices = @transform_6, window_bounds = array<i64: 8, 8>}, {pipeline_mode = #tpu.pipeline_mode<synchronous>, transform_indices = @transform_7, window_bounds = array<i64: 8, 1>}, {transform_indices = @transform_8, window_bounds = array<i64: 2, 8, 256>}]} {
    %c0 = arith.constant 0 : index
    %c0_0 = arith.constant 0 : index
    %0 = vector.load %arg2[%c0, %c0_0] : memref<4x256xf32, #tpu.memory_space<vmem>>, vector<4x256xf32>
    %c0_1 = arith.constant 0 : index
    %c0_2 = arith.constant 0 : index
    %c0_3 = arith.constant 0 : index
    %1 = vector.load %arg1[%c0_1, %c0_2, %c0_3] : memref<2x8x256xf32, #tpu.memory_space<vmem>>, vector<1x8x256xf32>
    %2 = vector.shape_cast %1 : vector<1x8x256xf32> to vector<8x256xf32>
    %c0_4 = arith.constant 0 : index
    %c0_5 = arith.constant 0 : index
    %3 = vector.load %arg3[%c0_4, %c0_5] : memref<8x8xf32, #tpu.memory_space<vmem>>, vector<8x8xf32>
    %cst = arith.constant dense<0.000000e+00> : vector<8x256xf32>
    %4 = tpu.matmul %3, %2, %cst {dimension_numbers = #tpu.dot_dimension_numbers<[1], [0], [0], [1], [0, 0, 1, 1], [], []>} : vector<8x8xf32>, vector<8x256xf32>, vector<8x256xf32> -> vector<8x256xf32>
    %c0_6 = arith.constant 0 : index
    %c0_7 = arith.constant 0 : index
    %5 = vector.load %arg4[%c0_6, %c0_7] : memref<8x1xf32, #tpu.memory_space<vmem>>, vector<8x1xf32>
    %6 = vector.broadcast %5 : vector<8x1xf32> to vector<8x256xf32>
    %7 = arith.addf %4, %6 : vector<8x256xf32>
    %cst_8 = arith.constant 0.000000e+00 : f32
    %8 = vector.broadcast %cst_8 : f32 to vector<8x256xf32>
    %9 = arith.maximumf %7, %8 : vector<8x256xf32>
    %c17_i32 = arith.constant 17 : i32
    %10 = tpu.dynamic_rotate %9 by %c17_i32 dim 1 : vector<8x256xf32>, i32 -> vector<8x256xf32>
    %11 = vector.extract_strided_slice %0 {offsets = [0, 0], sizes = [1, 256], strides = [1, 1]} : vector<4x256xf32> to vector<1x256xf32>
    %12 = vector.broadcast %11 : vector<1x256xf32> to vector<8x256xf32>
    %13 = arith.mulf %10, %12 : vector<8x256xf32>
    %c0_9 = arith.constant 0 : index
    %c0_10 = arith.constant 0 : index
    %c0_11 = arith.constant 0 : index
    %14 = vector.load %arg5[%c0_9, %c0_10, %c0_11] : memref<5x8x8xf32, #tpu.memory_space<vmem>>, vector<1x8x8xf32>
    %15 = vector.shape_cast %14 : vector<1x8x8xf32> to vector<8x8xf32>
    %cst_12 = arith.constant dense<0.000000e+00> : vector<8x256xf32>
    %16 = tpu.matmul %15, %13, %cst_12 {dimension_numbers = #tpu.dot_dimension_numbers<[1], [0], [0], [1], [0, 0, 1, 1], [], []>} : vector<8x8xf32>, vector<8x256xf32>, vector<8x256xf32> -> vector<8x256xf32>
    %c16_i32 = arith.constant 16 : i32
    %17 = tpu.dynamic_rotate %9 by %c16_i32 dim 1 : vector<8x256xf32>, i32 -> vector<8x256xf32>
    %18 = vector.extract_strided_slice %0 {offsets = [1, 0], sizes = [1, 256], strides = [1, 1]} : vector<4x256xf32> to vector<1x256xf32>
    %19 = vector.broadcast %18 : vector<1x256xf32> to vector<8x256xf32>
    %20 = arith.mulf %17, %19 : vector<8x256xf32>
    %c1 = arith.constant 1 : index
    %c0_13 = arith.constant 0 : index
    %c0_14 = arith.constant 0 : index
    %21 = vector.load %arg5[%c1, %c0_13, %c0_14] : memref<5x8x8xf32, #tpu.memory_space<vmem>>, vector<1x8x8xf32>
    %22 = vector.shape_cast %21 : vector<1x8x8xf32> to vector<8x8xf32>
    %cst_15 = arith.constant dense<0.000000e+00> : vector<8x256xf32>
    %23 = tpu.matmul %22, %20, %cst_15 {dimension_numbers = #tpu.dot_dimension_numbers<[1], [0], [0], [1], [0, 0, 1, 1], [], []>} : vector<8x8xf32>, vector<8x256xf32>, vector<8x256xf32> -> vector<8x256xf32>
    %24 = arith.addf %16, %23 : vector<8x256xf32>
    %c15_i32 = arith.constant 15 : i32
    %25 = tpu.dynamic_rotate %9 by %c15_i32 dim 1 : vector<8x256xf32>, i32 -> vector<8x256xf32>
    %26 = vector.extract_strided_slice %0 {offsets = [2, 0], sizes = [1, 256], strides = [1, 1]} : vector<4x256xf32> to vector<1x256xf32>
    %27 = vector.broadcast %26 : vector<1x256xf32> to vector<8x256xf32>
    %28 = arith.mulf %25, %27 : vector<8x256xf32>
    %c2 = arith.constant 2 : index
    %c0_16 = arith.constant 0 : index
    %c0_17 = arith.constant 0 : index
    %29 = vector.load %arg5[%c2, %c0_16, %c0_17] : memref<5x8x8xf32, #tpu.memory_space<vmem>>, vector<1x8x8xf32>
    %30 = vector.shape_cast %29 : vector<1x8x8xf32> to vector<8x8xf32>
    %cst_18 = arith.constant dense<0.000000e+00> : vector<8x256xf32>
    %31 = tpu.matmul %30, %28, %cst_18 {dimension_numbers = #tpu.dot_dimension_numbers<[1], [0], [0], [1], [0, 0, 1, 1], [], []>} : vector<8x8xf32>, vector<8x256xf32>, vector<8x256xf32> -> vector<8x256xf32>
    %32 = arith.addf %24, %31 : vector<8x256xf32>
    %c1_i32 = arith.constant 1 : i32
    %33 = tpu.dynamic_rotate %9 by %c1_i32 dim 1 : vector<8x256xf32>, i32 -> vector<8x256xf32>
    %34 = vector.extract_strided_slice %0 {offsets = [3, 0], sizes = [1, 256], strides = [1, 1]} : vector<4x256xf32> to vector<1x256xf32>
    %35 = vector.broadcast %34 : vector<1x256xf32> to vector<8x256xf32>
    %36 = arith.mulf %33, %35 : vector<8x256xf32>
    %c3 = arith.constant 3 : index
    %c0_19 = arith.constant 0 : index
    %c0_20 = arith.constant 0 : index
    %37 = vector.load %arg5[%c3, %c0_19, %c0_20] : memref<5x8x8xf32, #tpu.memory_space<vmem>>, vector<1x8x8xf32>
    %38 = vector.shape_cast %37 : vector<1x8x8xf32> to vector<8x8xf32>
    %cst_21 = arith.constant dense<0.000000e+00> : vector<8x256xf32>
    %39 = tpu.matmul %38, %36, %cst_21 {dimension_numbers = #tpu.dot_dimension_numbers<[1], [0], [0], [1], [0, 0, 1, 1], [], []>} : vector<8x8xf32>, vector<8x256xf32>, vector<8x256xf32> -> vector<8x256xf32>
    %40 = arith.addf %32, %39 : vector<8x256xf32>
    %c4 = arith.constant 4 : index
    %c0_22 = arith.constant 0 : index
    %c0_23 = arith.constant 0 : index
    %41 = vector.load %arg5[%c4, %c0_22, %c0_23] : memref<5x8x8xf32, #tpu.memory_space<vmem>>, vector<1x8x8xf32>
    %42 = vector.shape_cast %41 : vector<1x8x8xf32> to vector<8x8xf32>
    %cst_24 = arith.constant dense<0.000000e+00> : vector<8x256xf32>
    %43 = tpu.matmul %42, %9, %cst_24 {dimension_numbers = #tpu.dot_dimension_numbers<[1], [0], [0], [1], [0, 0, 1, 1], [], []>} : vector<8x8xf32>, vector<8x256xf32>, vector<8x256xf32> -> vector<8x256xf32>
    %44 = arith.addf %40, %43 : vector<8x256xf32>
    %c0_25 = arith.constant 0 : index
    %c0_26 = arith.constant 0 : index
    %45 = vector.load %arg6[%c0_25, %c0_26] : memref<8x1xf32, #tpu.memory_space<vmem>>, vector<8x1xf32>
    %46 = vector.broadcast %45 : vector<8x1xf32> to vector<8x256xf32>
    %47 = arith.addf %44, %46 : vector<8x256xf32>
    %cst_27 = arith.constant 0.000000e+00 : f32
    %48 = vector.broadcast %cst_27 : f32 to vector<8x256xf32>
    %49 = arith.maximumf %47, %48 : vector<8x256xf32>
    %c0_28 = arith.constant 0 : index
    %c0_29 = arith.constant 0 : index
    %50 = vector.load %arg7[%c0_28, %c0_29] : memref<8x8xf32, #tpu.memory_space<vmem>>, vector<8x8xf32>
    %cst_30 = arith.constant dense<0.000000e+00> : vector<8x256xf32>
    %51 = tpu.matmul %50, %49, %cst_30 {dimension_numbers = #tpu.dot_dimension_numbers<[1], [0], [0], [1], [0, 0, 1, 1], [], []>} : vector<8x8xf32>, vector<8x256xf32>, vector<8x256xf32> -> vector<8x256xf32>
    %c0_31 = arith.constant 0 : index
    %c0_32 = arith.constant 0 : index
    %52 = vector.load %arg8[%c0_31, %c0_32] : memref<8x1xf32, #tpu.memory_space<vmem>>, vector<8x1xf32>
    %53 = vector.broadcast %52 : vector<8x1xf32> to vector<8x256xf32>
    %54 = arith.addf %51, %53 : vector<8x256xf32>
    %cst_33 = arith.constant 0.000000e+00 : f32
    %55 = vector.broadcast %cst_33 : f32 to vector<8x256xf32>
    %56 = arith.maximumf %54, %55 : vector<8x256xf32>
    %57 = arith.addf %2, %56 : vector<8x256xf32>
    %c0_34 = arith.constant 0 : index
    %c0_35 = arith.constant 0 : index
    %c0_36 = arith.constant 0 : index
    %58 = vector.load %arg9[%c0_34, %c0_35, %c0_36] : memref<2x8x256xf32, #tpu.memory_space<vmem>>, vector<1x8x256xf32>
    %59 = vector.shape_cast %58 : vector<1x8x256xf32> to vector<8x256xf32>
    %60 = vector.shape_cast %57 : vector<8x256xf32> to vector<1x8x256xf32>
    tpu.vector_store %arg9[%c0_34, %c0_35, %c0_36], %60 {strides = array<i32>} : memref<2x8x256xf32, #tpu.memory_space<vmem>>, vector<1x8x256xf32>,
    %c1_37 = arith.constant 1 : index
    %c0_38 = arith.constant 0 : index
    %c0_39 = arith.constant 0 : index
    %61 = vector.load %arg1[%c1_37, %c0_38, %c0_39] : memref<2x8x256xf32, #tpu.memory_space<vmem>>, vector<1x8x256xf32>
    %62 = vector.shape_cast %61 : vector<1x8x256xf32> to vector<8x256xf32>
    %c0_40 = arith.constant 0 : index
    %c0_41 = arith.constant 0 : index
    %63 = vector.load %arg3[%c0_40, %c0_41] : memref<8x8xf32, #tpu.memory_space<vmem>>, vector<8x8xf32>
    %cst_42 = arith.constant dense<0.000000e+00> : vector<8x256xf32>
    %64 = tpu.matmul %63, %62, %cst_42 {dimension_numbers = #tpu.dot_dimension_numbers<[1], [0], [0], [1], [0, 0, 1, 1], [], []>} : vector<8x8xf32>, vector<8x256xf32>, vector<8x256xf32> -> vector<8x256xf32>
    %c0_43 = arith.constant 0 : index
    %c0_44 = arith.constant 0 : index
    %65 = vector.load %arg4[%c0_43, %c0_44] : memref<8x1xf32, #tpu.memory_space<vmem>>, vector<8x1xf32>
    %66 = vector.broadcast %65 : vector<8x1xf32> to vector<8x256xf32>
    %67 = arith.addf %64, %66 : vector<8x256xf32>
    %cst_45 = arith.constant 0.000000e+00 : f32
    %68 = vector.broadcast %cst_45 : f32 to vector<8x256xf32>
    %69 = arith.maximumf %67, %68 : vector<8x256xf32>
    %c17_i32_46 = arith.constant 17 : i32
    %70 = tpu.dynamic_rotate %69 by %c17_i32_46 dim 1 : vector<8x256xf32>, i32 -> vector<8x256xf32>
    %71 = vector.extract_strided_slice %0 {offsets = [0, 0], sizes = [1, 256], strides = [1, 1]} : vector<4x256xf32> to vector<1x256xf32>
    %72 = vector.broadcast %71 : vector<1x256xf32> to vector<8x256xf32>
    %73 = arith.mulf %70, %72 : vector<8x256xf32>
    %c0_47 = arith.constant 0 : index
    %c0_48 = arith.constant 0 : index
    %c0_49 = arith.constant 0 : index
    %74 = vector.load %arg5[%c0_47, %c0_48, %c0_49] : memref<5x8x8xf32, #tpu.memory_space<vmem>>, vector<1x8x8xf32>
    %75 = vector.shape_cast %74 : vector<1x8x8xf32> to vector<8x8xf32>
    %cst_50 = arith.constant dense<0.000000e+00> : vector<8x256xf32>
    %76 = tpu.matmul %75, %73, %cst_50 {dimension_numbers = #tpu.dot_dimension_numbers<[1], [0], [0], [1], [0, 0, 1, 1], [], []>} : vector<8x8xf32>, vector<8x256xf32>, vector<8x256xf32> -> vector<8x256xf32>
    %c16_i32_51 = arith.constant 16 : i32
    %77 = tpu.dynamic_rotate %69 by %c16_i32_51 dim 1 : vector<8x256xf32>, i32 -> vector<8x256xf32>
    %78 = vector.extract_strided_slice %0 {offsets = [1, 0], sizes = [1, 256], strides = [1, 1]} : vector<4x256xf32> to vector<1x256xf32>
    %79 = vector.broadcast %78 : vector<1x256xf32> to vector<8x256xf32>
    %80 = arith.mulf %77, %79 : vector<8x256xf32>
    %c1_52 = arith.constant 1 : index
    %c0_53 = arith.constant 0 : index
    %c0_54 = arith.constant 0 : index
    %81 = vector.load %arg5[%c1_52, %c0_53, %c0_54] : memref<5x8x8xf32, #tpu.memory_space<vmem>>, vector<1x8x8xf32>
    %82 = vector.shape_cast %81 : vector<1x8x8xf32> to vector<8x8xf32>
    %cst_55 = arith.constant dense<0.000000e+00> : vector<8x256xf32>
    %83 = tpu.matmul %82, %80, %cst_55 {dimension_numbers = #tpu.dot_dimension_numbers<[1], [0], [0], [1], [0, 0, 1, 1], [], []>} : vector<8x8xf32>, vector<8x256xf32>, vector<8x256xf32> -> vector<8x256xf32>
    %84 = arith.addf %76, %83 : vector<8x256xf32>
    %c15_i32_56 = arith.constant 15 : i32
    %85 = tpu.dynamic_rotate %69 by %c15_i32_56 dim 1 : vector<8x256xf32>, i32 -> vector<8x256xf32>
    %86 = vector.extract_strided_slice %0 {offsets = [2, 0], sizes = [1, 256], strides = [1, 1]} : vector<4x256xf32> to vector<1x256xf32>
    %87 = vector.broadcast %86 : vector<1x256xf32> to vector<8x256xf32>
    %88 = arith.mulf %85, %87 : vector<8x256xf32>
    %c2_57 = arith.constant 2 : index
    %c0_58 = arith.constant 0 : index
    %c0_59 = arith.constant 0 : index
    %89 = vector.load %arg5[%c2_57, %c0_58, %c0_59] : memref<5x8x8xf32, #tpu.memory_space<vmem>>, vector<1x8x8xf32>
    %90 = vector.shape_cast %89 : vector<1x8x8xf32> to vector<8x8xf32>
    %cst_60 = arith.constant dense<0.000000e+00> : vector<8x256xf32>
    %91 = tpu.matmul %90, %88, %cst_60 {dimension_numbers = #tpu.dot_dimension_numbers<[1], [0], [0], [1], [0, 0, 1, 1], [], []>} : vector<8x8xf32>, vector<8x256xf32>, vector<8x256xf32> -> vector<8x256xf32>
    %92 = arith.addf %84, %91 : vector<8x256xf32>
    %c1_i32_61 = arith.constant 1 : i32
    %93 = tpu.dynamic_rotate %69 by %c1_i32_61 dim 1 : vector<8x256xf32>, i32 -> vector<8x256xf32>
    %94 = vector.extract_strided_slice %0 {offsets = [3, 0], sizes = [1, 256], strides = [1, 1]} : vector<4x256xf32> to vector<1x256xf32>
    %95 = vector.broadcast %94 : vector<1x256xf32> to vector<8x256xf32>
    %96 = arith.mulf %93, %95 : vector<8x256xf32>
    %c3_62 = arith.constant 3 : index
    %c0_63 = arith.constant 0 : index
    %c0_64 = arith.constant 0 : index
    %97 = vector.load %arg5[%c3_62, %c0_63, %c0_64] : memref<5x8x8xf32, #tpu.memory_space<vmem>>, vector<1x8x8xf32>
    %98 = vector.shape_cast %97 : vector<1x8x8xf32> to vector<8x8xf32>
    %cst_65 = arith.constant dense<0.000000e+00> : vector<8x256xf32>
    %99 = tpu.matmul %98, %96, %cst_65 {dimension_numbers = #tpu.dot_dimension_numbers<[1], [0], [0], [1], [0, 0, 1, 1], [], []>} : vector<8x8xf32>, vector<8x256xf32>, vector<8x256xf32> -> vector<8x256xf32>
    %100 = arith.addf %92, %99 : vector<8x256xf32>
    %c4_66 = arith.constant 4 : index
    %c0_67 = arith.constant 0 : index
    %c0_68 = arith.constant 0 : index
    %101 = vector.load %arg5[%c4_66, %c0_67, %c0_68] : memref<5x8x8xf32, #tpu.memory_space<vmem>>, vector<1x8x8xf32>
    %102 = vector.shape_cast %101 : vector<1x8x8xf32> to vector<8x8xf32>
    %cst_69 = arith.constant dense<0.000000e+00> : vector<8x256xf32>
    %103 = tpu.matmul %102, %69, %cst_69 {dimension_numbers = #tpu.dot_dimension_numbers<[1], [0], [0], [1], [0, 0, 1, 1], [], []>} : vector<8x8xf32>, vector<8x256xf32>, vector<8x256xf32> -> vector<8x256xf32>
    %104 = arith.addf %100, %103 : vector<8x256xf32>
    %c0_70 = arith.constant 0 : index
    %c0_71 = arith.constant 0 : index
    %105 = vector.load %arg6[%c0_70, %c0_71] : memref<8x1xf32, #tpu.memory_space<vmem>>, vector<8x1xf32>
    %106 = vector.broadcast %105 : vector<8x1xf32> to vector<8x256xf32>
    %107 = arith.addf %104, %106 : vector<8x256xf32>
    %cst_72 = arith.constant 0.000000e+00 : f32
    %108 = vector.broadcast %cst_72 : f32 to vector<8x256xf32>
    %109 = arith.maximumf %107, %108 : vector<8x256xf32>
    %c0_73 = arith.constant 0 : index
    %c0_74 = arith.constant 0 : index
    %110 = vector.load %arg7[%c0_73, %c0_74] : memref<8x8xf32, #tpu.memory_space<vmem>>, vector<8x8xf32>
    %cst_75 = arith.constant dense<0.000000e+00> : vector<8x256xf32>
    %111 = tpu.matmul %110, %109, %cst_75 {dimension_numbers = #tpu.dot_dimension_numbers<[1], [0], [0], [1], [0, 0, 1, 1], [], []>} : vector<8x8xf32>, vector<8x256xf32>, vector<8x256xf32> -> vector<8x256xf32>
    %c0_76 = arith.constant 0 : index
    %c0_77 = arith.constant 0 : index
    %112 = vector.load %arg8[%c0_76, %c0_77] : memref<8x1xf32, #tpu.memory_space<vmem>>, vector<8x1xf32>
    %113 = vector.broadcast %112 : vector<8x1xf32> to vector<8x256xf32>
    %114 = arith.addf %111, %113 : vector<8x256xf32>
    %cst_78 = arith.constant 0.000000e+00 : f32
    %115 = vector.broadcast %cst_78 : f32 to vector<8x256xf32>
    %116 = arith.maximumf %114, %115 : vector<8x256xf32>
    %117 = arith.addf %62, %116 : vector<8x256xf32>
    %c1_79 = arith.constant 1 : index
    %c0_80 = arith.constant 0 : index
    %c0_81 = arith.constant 0 : index
    %118 = vector.load %arg9[%c1_79, %c0_80, %c0_81] : memref<2x8x256xf32, #tpu.memory_space<vmem>>, vector<1x8x256xf32>
    %119 = vector.shape_cast %118 : vector<1x8x256xf32> to vector<8x256xf32>
    %120 = vector.shape_cast %117 : vector<8x256xf32> to vector<1x8x256xf32>
    tpu.vector_store %arg9[%c1_79, %c0_80, %c0_81], %120 {strides = array<i32>} : memref<2x8x256xf32, #tpu.memory_space<vmem>>, vector<1x8x256xf32>,
    return
  }
  func.func @transform_0(%arg0: i32) -> (i32, i32, i32) {
    %c0_i32 = arith.constant 0 : i32
    %c0_i32_0 = arith.constant 0 : i32
    %c0_i32_1 = arith.constant 0 : i32
    return %arg0, %c0_i32, %c0_i32_0 : i32, i32, i32
  }
  func.func @transform_1(%arg0: i32) -> (i32, i32) {
    %c0_i32 = arith.constant 0 : i32
    %c0_i32_0 = arith.constant 0 : i32
    %c0_i32_1 = arith.constant 0 : i32
    return %c0_i32, %c0_i32_0 : i32, i32
  }
  func.func @transform_2(%arg0: i32) -> (i32, i32) {
    %c0_i32 = arith.constant 0 : i32
    %c0_i32_0 = arith.constant 0 : i32
    %c0_i32_1 = arith.constant 0 : i32
    return %c0_i32, %c0_i32_0 : i32, i32
  }
  func.func @transform_3(%arg0: i32) -> (i32, i32) {
    %c0_i32 = arith.constant 0 : i32
    %c0_i32_0 = arith.constant 0 : i32
    %c0_i32_1 = arith.constant 0 : i32
    return %c0_i32, %c0_i32_0 : i32, i32
  }
  func.func @transform_4(%arg0: i32) -> (i32, i32, i32) {
    %c0_i32 = arith.constant 0 : i32
    %c0_i32_0 = arith.constant 0 : i32
    %c0_i32_1 = arith.constant 0 : i32
    %c0_i32_2 = arith.constant 0 : i32
    return %c0_i32, %c0_i32_0, %c0_i32_1 : i32, i32, i32
  }
  func.func @transform_5(%arg0: i32) -> (i32, i32) {
    %c0_i32 = arith.constant 0 : i32
    %c0_i32_0 = arith.constant 0 : i32
    %c0_i32_1 = arith.constant 0 : i32
    return %c0_i32, %c0_i32_0 : i32, i32
  }
  func.func @transform_6(%arg0: i32) -> (i32, i32) {
    %c0_i32 = arith.constant 0 : i32
    %c0_i32_0 = arith.constant 0 : i32
    %c0_i32_1 = arith.constant 0 : i32
    return %c0_i32, %c0_i32_0 : i32, i32
  }
  func.func @transform_7(%arg0: i32) -> (i32, i32) {
    %c0_i32 = arith.constant 0 : i32
    %c0_i32_0 = arith.constant 0 : i32
    %c0_i32_1 = arith.constant 0 : i32
    return %c0_i32, %c0_i32_0 : i32, i32
  }
  func.func @transform_8(%arg0: i32) -> (i32, i32, i32) {
    %c0_i32 = arith.constant 0 : i32
    %c0_i32_0 = arith.constant 0 : i32
    %c0_i32_1 = arith.constant 0 : i32
    return %arg0, %c0_i32, %c0_i32_0 : i32, i32, i32
  }
}

</mosaic_0001>

<bundles_post_ra>
// kernel: residual_block.1
= control target key start
LH: loop header
LB: loop body
LE: loop exit
PB: predicated region body
PF: predicated region fallthrough
CT: control target
= control target key end

     0   :  { %s1296_s27 = smov 0   ;;  %s1555_s0 = inlined_call_operand.vmem [shape: f32[4,8,256], index: 0, kind: input, shape index: {}]   ;;  %s1556_s1 = inlined_call_operand.vmem [shape: f32[4,256], index: 1, kind: input, shape index: {}]   ;;  %s1557_s2 = inlined_call_operand.vmem [shape: f32[8,8], index: 2, kind: input, shape index: {}]   ;;  %s1558_s3 = inlined_call_operand.vmem [shape: f32[8,1], index: 3, kind: input, shape index: {}]   ;;  %s1559_s4 = inlined_call_operand.vmem [shape: f32[5,8,8], index: 4, kind: input, shape index: {}]   ;;  %s1560_s5 = inlined_call_operand.vmem [shape: f32[8,1], index: 5, kind: input, shape index: {}]   ;;  %s1561_s6 = inlined_call_operand.vmem [shape: f32[8,8], index: 6, kind: input, shape index: {}]   ;;  %s1562_s7 = inlined_call_operand.vmem [shape: f32[8,1], index: 7, kind: input, shape index: {}]   ;;  %s1563_s8 = inlined_call_operand.vmem [shape: f32[4,8,256], index: 8, kind: output, shape index: {}]  }
   0x1 LB: > { %s1167_s28 = sadd.s32 4294967295, %s1244_s27   ;;  %p1171_p0 = scmp.ge.s32.totalorder %s1244_s27, 1  ;;  %s1244_s27 = sphi %s1296_s27, %s18_s27  }
   0x2   : > { %p264_p1 = scmp.lt.s32.totalorder %s1244_s27, 3 }
   0x4   : > { %p265_p2 = pnand %p1171_p0, %p264_p1 }
   0x5   : > { %s1172_s29 = sshll.u32 (!%p265_p2), %s1167_s28, 1  ;;  %s1247_s16 = smov (!%p265_p2), 15  }
   0x6   : > { %268 = sbr.rel (%p265_p2) target bundleno = 843 (0x34b), region = 52  ;;  %p301_p3 = scmp.lt.s32.totalorder (!%p265_p2), %s1172_s29, 3 }
   0x7   : > { %s1248_s17 = smov (!%p265_p2), 16   ;;  %s1249_s18 = smov (!%p265_p2), 17  }
   0x8   : > { %s1250_s19 = smov (!%p265_p2), 1  }
   0xb   : > { %v318_v0 = vld [vmem:[%s1558_s3] sm:$0xff]  ;;  %v1246_v1 = vmov 0   ;;  %s1565_s29 = smov (!%p301_p3, %s1172_s29), 3  ;;  %vm324_vm0 = vcmask 64512   ;;  %v374_v12 = vlaneseq  ;;  %v1379_v29 = vld [vmem:[%s1559_s4 + $0x8] sm:$0xff]  ;;  %v1415_v50 = vld [vmem:[%s1559_s4 + $0x10] sm:$0xff] }
   0xc   : > { %1235 = vset.pattern.permute.xlu0 %v1246_v1  ;;  %1236 = vset.pattern.permute.xlu1 %v1246_v1  ;;  %s1220_s10 = sshll.u32 %s1565_s29, 4  ;;  %v1320_v2 = vld [vmem:[%s1557_s2] sm:$0xff]  ;;  %v1449_v61 = vld [vmem:[%s1559_s4 + $0x18] sm:$0xff] }
   0xd   : > { %321 = vperm.xlu0 %1235, %v318_v0   ;;  %1237 = vset.pattern.permute.xlu2 %v1246_v1  ;;  %s1315_s13 = scalar_lea.vmem %s1555_s0, %s1220_s10  ;;  %v314_v13 = vld [vmem:[%s1556_s1] sm:$0xff]  ;;  %v1357_v14 = vand.u32 127, %v374_v12 }
   0xe   : > { %v1323_v3 = vld [vmem:[%s1315_s13] sm:$0xff]  ;;  %v1326_v4 = vld [vmem:[%s1315_s13 + $0x8] sm:$0xff]  ;;  %v396_v15 = vperm.slane %v314_v13, 1  ;;  %v397_v16 = vperm.slane %v314_v13, 5  ;;  %v499_v25 = vperm.slane %v314_v13, 2  ;;  %v500_v26 = vperm.slane %v314_v13, 6 }
   0xf   : > { %343 = vmatpush.msra.mxu0 %v1323_v3  ;;  %363 = vmatpush.msra.mxu1 %v1326_v4  ;;  %vm393_vm1 = vcmp.lt.s32.totalorder %v1357_v14, 16  ;;  %v1367_v20 = vld [vmem:[%s1560_s5] sm:$0xff]  ;;  %v380_v30 = vperm.slane %v314_v13, 0  ;;  %v381_v31 = vperm.slane %v314_v13, 4  ;;  %vm496_vm2 = vcmp.lt.s32.totalorder %v1357_v14, 15  ;;  %v1427_v53 = vld [vmem:[%s1315_s13 + $0x10] sm:$0xff] }
  0x10   : > { %1178 = vmatmul.msk.f32.vlgmr.msra.gmra.mxu0 %vm324_vm0, %v1320_v2  ;;  %1179 = vmatmul.msk.f32.vlgmr.msra.gmra.mxu1 %vm324_vm0, %v1320_v2  ;;  %v1360_v18 = vperm.slane %v396_v15, 1  ;;  %v1362_v19 = vperm.slane %v397_v16, 1  ;;  %v1386_v33 = vperm.slane %v499_v25, 2  ;;  %v1388_v34 = vperm.slane %v500_v26, 2  ;;  %v1410_v49 = vld [vmem:[%s1559_s4] sm:$0xff]  ;;  %v1430_v54 = vld [vmem:[%s1315_s13 + $0x18] sm:$0xff] }
  0x11   : > { %vm376_vm3 = vcmp.lt.s32.totalorder %v1357_v14, 17  ;;  %v1391_v35 = vperm.slane %v380_v30, 0  ;;  %v1393_v36 = vperm.slane %v381_v31, 0  ;;  %v561_v41 = vperm.slane %v314_v13, 3  ;;  %v1454_v62 = vld [vmem:[%s1559_s4 + $0x20] sm:$0xff] }
  0x12   : > { %v562_v42 = vperm.slane %v314_v13, 7  ;;  %vm558_vm4 = vcmp.lt.s32.totalorder %v1357_v14, 1 }
  0x13   : > { %v1422_v51 = vperm.slane %v561_v41, 3  ;;  %v1483_v41 = vld [vmem:[%s1561_s6] sm:$0xff] }
  0x14   : > { %v1424_v52 = vperm.slane %v562_v42, 3 }
  0x7f   : > { %v322_v5 = vpop.permute.xlu0 %321 }
  0x8d   : > { %v345_v6 = vpop.f32.mrf.mxu0  ;;  %v365_v7 = vpop.f32.mrf.mxu1 }
  0x8e   : > { %v346_v8 = vadd.f32 %v345_v6, %v322_v5  ;;  %v366_v9 = vadd.f32 %v365_v7, %v322_v5 }
  0x90   : > { %v1334_v10 = vmax.f32 %v346_v8, 0.0  ;;  %v1336_v11 = vmax.f32 %v366_v9, 0.0 }
  0x92   : > { %494 = vrot.lane.b32.xlu2 %v1336_v11, %s1247_s16  ;;  %391 = vrot.lane.b32.xlu1 %v1336_v11, %s1248_s17 }
  0x93   : > { %389 = vrot.lane.b32.xlu0 %v1334_v10, %s1248_s17 }
  0x9a   : > { %370 = vrot.lane.b32.xlu2 %v1334_v10, %s1249_s18  ;;  %492 = vrot.lane.b32.xlu1 %v1334_v10, %s1247_s16 }
  0x9b   : > { %372 = vrot.lane.b32.xlu0 %v1336_v11, %s1249_s18 }
  0xa2   : > { %556 = vrot.lane.b32.xlu2 %v1336_v11, %s1250_s19  ;;  %554 = vrot.lane.b32.xlu1 %v1334_v10, %s1250_s19 }
  0xa3   : > { %736 = vperm.xlu0 %1235, %v318_v0  }
  0xaa   : > { %666 = vperm.xlu1 %1236, %v1367_v20  }
  0xec   : > { %v495_v17 = vpop.permute.xlu2 %494 }
  0xf4   : > { %v371_v32 = vpop.permute.xlu2 %370 }
  0xfc   : > { %v557_v55 = vpop.permute.xlu2 %556 }
 0x104   : > { %v392_v21 = vpop.permute.xlu1 %391 }
 0x105   : > { %v390_v22 = vpop.permute.xlu0 %389 }
 0x106   : > { %v395_v23 = vsel %vm393_vm1, %v392_v21, %v390_v22  ;;  %v394_v24 = vsel %vm393_vm1, %v390_v22, %v392_v21 }
 0x107   : > { %v402_v27 = vmul.f32 %v1360_v18, %v395_v23  ;;  %v403_v28 = vmul.f32 %v1362_v19, %v394_v24 }
 0x109   : > { %424 = vmatpush.msra.mxu2 %v402_v27  ;;  %444 = vmatpush.msra.mxu3 %v403_v28 }
 0x10a   : > { %1181 = vmatmul.msk.f32.vlgmr.msra.gmra.mxu2 %vm324_vm0, %v1379_v29  ;;  %1182 = vmatmul.msk.f32.vlgmr.msra.gmra.mxu3 %vm324_vm0, %v1379_v29 }
 0x10c   : > { %v493_v37 = vpop.permute.xlu1 %492 }
 0x10d   : > { %v497_v38 = vsel %vm496_vm2, %v493_v37, %v495_v17  ;;  %v498_v39 = vsel %vm496_vm2, %v495_v17, %v493_v37  ;;  %v373_v40 = vpop.permute.xlu0 %372 }
 0x10e   : > { %v377_v43 = vsel %vm376_vm3, %v371_v32, %v373_v40  ;;  %v378_v44 = vsel %vm376_vm3, %v373_v40, %v371_v32  ;;  %v505_v45 = vmul.f32 %v1386_v33, %v498_v39  ;;  %v506_v46 = vmul.f32 %v1388_v34, %v497_v38  ;;  %v1053_v40 = vld [vmem:[%s1562_s7] sm:$0xff] }
 0x10f   : > { %v386_v47 = vmul.f32 %v1391_v35, %v378_v44  ;;  %v387_v48 = vmul.f32 %v1393_v36, %v377_v43 }
 0x110   : > { %527 = vmatpush.msrb.mxu2 %v505_v45  ;;  %547 = vmatpush.msrb.mxu3 %v506_v46 }
 0x111   : > { %467 = vmatpush.msrb.mxu0 %v386_v47  ;;  %487 = vmatpush.msrb.mxu1 %v387_v48 }
 0x112   : > { %1184 = vmatmul.msk.f32.vlgmr.msrb.gmra.mxu1 %vm324_vm0, %v1410_v49  ;;  %1186 = vmatmul.msk.f32.vlgmr.msrb.gmra.mxu2 %vm324_vm0, %v1415_v50 }
 0x113   : > { %1187 = vmatmul.msk.f32.vlgmr.msrb.gmra.mxu3 %vm324_vm0, %v1415_v50  ;;  %636 = vmatpush.msra.mxu2 %v1334_v10 }
 0x114   : > { %656 = vmatpush.msra.mxu3 %v1336_v11  ;;  %1183 = vmatmul.msk.f32.vlgmr.msrb.gmra.mxu0 %vm324_vm0, %v1410_v49  ;;  %v555_v56 = vpop.permute.xlu1 %554 }
 0x115   : > { %v559_v57 = vsel %vm558_vm4, %v555_v56, %v557_v55  ;;  %v560_v58 = vsel %vm558_vm4, %v557_v55, %v555_v56  ;;  %757 = vmatpush.msrb.mxu2 %v1427_v53  ;;  %v737_v28 = vpop.permute.xlu0 %736 }
 0x116   : > { %777 = vmatpush.msrb.mxu3 %v1430_v54  ;;  %v567_v59 = vmul.f32 %v1422_v51, %v560_v58  ;;  %v568_v60 = vmul.f32 %v1424_v52, %v559_v57 }
 0x118   : > { %589 = vmatpush.msra.mxu0 %v567_v59  ;;  %609 = vmatpush.msra.mxu1 %v568_v60 }
 0x11a   : > { %1190 = vmatmul.msk.f32.vlgmr.msra.gmra.mxu1 %vm324_vm0, %v1449_v61  ;;  %1192 = vmatmul.msk.f32.vlgmr.msra.gmra.mxu2 %vm324_vm0, %v1454_v62 }
 0x11b   : > { %1193 = vmatmul.msk.f32.vlgmr.msra.gmra.mxu3 %vm324_vm0, %v1454_v62 }
 0x11c   : > { %1189 = vmatmul.msk.f32.vlgmr.msra.gmra.mxu0 %vm324_vm0, %v1449_v61  ;;  %v667_v21 = vpop.permute.xlu1 %666 }
 0x122   : > { %1198 = vmatmul.msk.f32.vlgmr.msrb.gmra.mxu2 %vm324_vm0, %v1320_v2 }
 0x123   : > { %1199 = vmatmul.msk.f32.vlgmr.msrb.gmra.mxu3 %vm324_vm0, %v1320_v2 }
 0x18d   : > { %v426_v63 = vpop.f32.mrf.mxu2  ;;  %v446_v0 = vpop.f32.mrf.mxu3 }
 0x18f   : > { %v489_v1 = vpop.f32.mrf.mxu1 }
 0x190   : > { %v490_v9 = vadd.f32 %v489_v1, %v446_v0 }
 0x191   : > { %v469_v5 = vpop.f32.mrf.mxu0 }
 0x192   : > { %v470_v6 = vadd.f32 %v469_v5, %v426_v63 }
 0x195   : > { %v529_v7 = vpop.f32.mrf.mxu2 }
 0x196   : > { %v549_v8 = vpop.f32.mrf.mxu3  ;;  %v552_v10 = vadd.f32 %v529_v7, %v470_v6 }
 0x197   : > { %v553_v11 = vadd.f32 %v549_v8, %v490_v9  ;;  %v611_v13 = vpop.f32.mrf.mxu1 }
 0x199   : > { %v591_v12 = vpop.f32.mrf.mxu0  ;;  %v615_v16 = vadd.f32 %v611_v13, %v553_v11 }
 0x19a   : > { %v614_v15 = vadd.f32 %v591_v12, %v552_v10 }
 0x19d   : > { %v638_v17 = vpop.f32.mrf.mxu2 }
 0x19e   : > { %v661_v22 = vadd.f32 %v638_v17, %v614_v15  ;;  %v658_v23 = vpop.f32.mrf.mxu3 }
 0x19f   : > { %v662_v24 = vadd.f32 %v658_v23, %v615_v16 }
 0x1a0   : > { %v669_v2 = vadd.f32 %v667_v21, %v661_v22 }
 0x1a1   : > { %v670_v25 = vadd.f32 %v667_v21, %v662_v24 }
 0x1a2   : > { %v671_v26 = vmax.f32 %v669_v2, 0.0 }
 0x1a3   : > { %v672_v27 = vmax.f32 %v670_v25, 0.0 }
 0x1a4   : > { %698 = vmatpush.msrb.mxu0 %v671_v26 }
 0x1a5   : > { %718 = vmatpush.msrb.mxu1 %v672_v27  ;;  %v759_v30 = vpop.f32.mrf.mxu2  ;;  %1194 = vmatmul.msk.f32.vlgmr.msrb.gmra.mxu0 %vm324_vm0, %v1483_v41 }
 0x1a6   : > { %v760_v31 = vadd.f32 %v759_v30, %v737_v28  ;;  %v779_v32 = vpop.f32.mrf.mxu3  ;;  %1195 = vmatmul.msk.f32.vlgmr.msrb.gmra.mxu1 %vm324_vm0, %v1483_v41 }
 0x1a7   : > { %v780_v37 = vadd.f32 %v779_v32, %v737_v28 }
 0x1a8   : > { %v782_v38 = vmax.f32 %v760_v31, 0.0 }
 0x1a9   : > { %v783_v39 = vmax.f32 %v780_v37, 0.0 }
 0x1aa   : > { %793 = vrot.lane.b32.xlu1 %v782_v38, %s1248_s17  ;;  %784 = vrot.lane.b32.xlu2 %v782_v38, %s1249_s18 }
 0x1ab   : > { %786 = vrot.lane.b32.xlu0 %v783_v39, %s1249_s18 }
 0x1b2   : > { %890 = vrot.lane.b32.xlu1 %v783_v39, %s1247_s16  ;;  %795 = vrot.lane.b32.xlu2 %v783_v39, %s1248_s17 }
 0x1b3   : > { %888 = vrot.lane.b32.xlu0 %v782_v38, %s1247_s16 }
 0x1ba   : > { %1045 = vperm.xlu1 %1236, %v1367_v20   ;;  %942 = vrot.lane.b32.xlu2 %v782_v38, %s1250_s19 }
 0x1bb   : > { %944 = vrot.lane.b32.xlu0 %v783_v39, %s1250_s19  ;;  %s1538_s19 = scalar_lea.vmem %s1563_s8, %s1220_s10 }
 0x1c2   : > { %677 = vperm.xlu2 %1237, %v1053_v40  }
 0x1c3   : > { %1056 = vperm.xlu0 %1235, %v1053_v40  }
 0x204   : > { %v785_v20 = vpop.permute.xlu2 %784 }
 0x20c   : > { %v796_v42 = vpop.permute.xlu2 %795 }
 0x21c   : > { %v794_v43 = vpop.permute.xlu1 %793 }
 0x21d   : > { %v787_v44 = vpop.permute.xlu0 %786  ;;  %v797_v45 = vsel %vm393_vm1, %v794_v43, %v796_v42  ;;  %v798_v46 = vsel %vm393_vm1, %v796_v42, %v794_v43 }
 0x21e   : > { %v788_v47 = vsel %vm376_vm3, %v785_v20, %v787_v44  ;;  %v789_v48 = vsel %vm376_vm3, %v787_v44, %v785_v20  ;;  %v799_v55 = vmul.f32 %v798_v46, %v1360_v18  ;;  %v800_v56 = vmul.f32 %v797_v45, %v1362_v19 }
 0x21f   : > { %v790_v57 = vmul.f32 %v789_v48, %v1391_v35  ;;  %v791_v58 = vmul.f32 %v788_v47, %v1393_v36 }
 0x220   : > { %820 = vmatpush.msra.mxu0 %v799_v55  ;;  %840 = vmatpush.msra.mxu1 %v800_v56 }
 0x221   : > { %863 = vmatpush.msra.mxu2 %v790_v57  ;;  %883 = vmatpush.msra.mxu3 %v791_v58 }
 0x222   : > { %1201 = vmatmul.msk.f32.vlgmr.msra.gmra.mxu0 %vm324_vm0, %v1379_v29  ;;  %1202 = vmatmul.msk.f32.vlgmr.msra.gmra.mxu1 %vm324_vm0, %v1379_v29  ;;  %v943_v29 = vpop.permute.xlu2 %942 }
 0x223   : > { %1203 = vmatmul.msk.f32.vlgmr.msra.gmra.mxu2 %vm324_vm0, %v1410_v49  ;;  %1204 = vmatmul.msk.f32.vlgmr.msra.gmra.mxu3 %vm324_vm0, %v1410_v49  ;;  %v720_v1 = vpop.f32.mrf.mxu1 }
 0x224   : > { %v891_v18 = vpop.permute.xlu1 %890 }
 0x225   : > { %v889_v19 = vpop.permute.xlu0 %888 }
 0x226   : > { %v892_v35 = vsel %vm496_vm2, %v889_v19, %v891_v18  ;;  %v893_v36 = vsel %vm496_vm2, %v891_v18, %v889_v19 }
 0x227   : > { %v894_v59 = vmul.f32 %v893_v36, %v1386_v33  ;;  %v895_v60 = vmul.f32 %v892_v35, %v1388_v34 }
 0x229   : > { %915 = vmatpush.msrb.mxu0 %v894_v59  ;;  %935 = vmatpush.msrb.mxu1 %v895_v60 }
 0x22a   : > { %1206 = vmatmul.msk.f32.vlgmr.msrb.gmra.mxu0 %vm324_vm0, %v1415_v50  ;;  %1207 = vmatmul.msk.f32.vlgmr.msrb.gmra.mxu1 %vm324_vm0, %v1415_v50  ;;  %v678_v14 = vpop.permute.xlu2 %677  ;;  %v700_v50 = vpop.f32.mrf.mxu0 }
 0x22b   : > { %1015 = vmatpush.msra.mxu0 %v782_v38  ;;  %1035 = vmatpush.msra.mxu1 %v783_v39  ;;  %v721_v5 = vadd.f32 %v720_v1, %v678_v14 }
 0x22c   : > { %v1046_v26 = vpop.permute.xlu1 %1045 }
 0x22d   : > { %v945_v49 = vpop.permute.xlu0 %944  ;;  %v724_v6 = vmax.f32 %v721_v5, 0.0 }
 0x22e   : > { %v946_v63 = vsel %vm558_vm4, %v943_v29, %v945_v49  ;;  %v947_v33 = vsel %vm558_vm4, %v945_v49, %v943_v29 }
 0x22f   : > { %v948_v34 = vmul.f32 %v947_v33, %v1422_v51  ;;  %v949_v0 = vmul.f32 %v946_v63, %v1424_v52  ;;  %v701_v51 = vadd.f32 %v700_v50, %v678_v14  ;;  %v726_v7 = vadd.f32 %v724_v6, %v1326_v4 }
 0x231   : > { %969 = vmatpush.msrb.mxu2 %v948_v34  ;;  %989 = vmatpush.msrb.mxu3 %v949_v0  ;;  %v723_v52 = vmax.f32 %v701_v51, 0.0  ;;  %728 = vst [vmem:[%s1538_s19 + $0x8] sm:$0xff] %v726_v7 }
 0x232   : > { %1209 = vmatmul.msk.f32.vlgmr.msrb.gmra.mxu2 %vm324_vm0, %v1449_v61  ;;  %1210 = vmatmul.msk.f32.vlgmr.msrb.gmra.mxu3 %vm324_vm0, %v1449_v61 }
 0x233   : > { %1212 = vmatmul.msk.f32.vlgmr.msra.gmra.mxu0 %vm324_vm0, %v1454_v62  ;;  %1213 = vmatmul.msk.f32.vlgmr.msra.gmra.mxu1 %vm324_vm0, %v1454_v62  ;;  %v725_v61 = vadd.f32 %v723_v52, %v1323_v3 }
 0x235   : > { %727 = vst [vmem:[%s1538_s19] sm:$0xff] %v725_v61  ;;  %v1057_v32 = vpop.permute.xlu0 %1056 }
 0x29f   : > { %v822_v62 = vpop.f32.mrf.mxu0  ;;  %v842_v8 = vpop.f32.mrf.mxu1 }
 0x2a6   : > { %v865_v11 = vpop.f32.mrf.mxu2  ;;  %v885_v12 = vpop.f32.mrf.mxu3 }
 0x2a7   : > { %v917_v9 = vpop.f32.mrf.mxu0  ;;  %v937_v10 = vpop.f32.mrf.mxu1  ;;  %v866_v13 = vadd.f32 %v865_v11, %v822_v62  ;;  %v886_v15 = vadd.f32 %v885_v12, %v842_v8 }
 0x2a9   : > { %v940_v16 = vadd.f32 %v917_v9, %v866_v13  ;;  %v941_v17 = vadd.f32 %v937_v10, %v886_v15 }
 0x2b0   : > { %v1017_v21 = vpop.f32.mrf.mxu0  ;;  %v1037_v22 = vpop.f32.mrf.mxu1 }
 0x2b5   : > { %v971_v23 = vpop.f32.mrf.mxu2  ;;  %v991_v24 = vpop.f32.mrf.mxu3 }
 0x2b6   : > { %v994_v2 = vadd.f32 %v971_v23, %v940_v16  ;;  %v995_v3 = vadd.f32 %v991_v24, %v941_v17 }
 0x2b8   : > { %v1040_v25 = vadd.f32 %v1017_v21, %v994_v2  ;;  %v1041_v4 = vadd.f32 %v1037_v22, %v995_v3 }
 0x2ba   : > { %v1048_v27 = vadd.f32 %v1046_v26, %v1040_v25  ;;  %v1049_v28 = vadd.f32 %v1046_v26, %v1041_v4 }
 0x2bc   : > { %v1050_v30 = vmax.f32 %v1048_v27, 0.0  ;;  %v1051_v31 = vmax.f32 %v1049_v28, 0.0 }
 0x2be   : > { %1077 = vmatpush.msra.mxu2 %v1050_v30  ;;  %1097 = vmatpush.msra.mxu3 %v1051_v31 }
 0x2bf   : > { %1214 = vmatmul.msk.f32.vlgmr.msra.gmra.mxu2 %vm324_vm0, %v1483_v41  ;;  %1215 = vmatmul.msk.f32.vlgmr.msra.gmra.mxu3 %vm324_vm0, %v1483_v41 }
 0x342   : > { %v1079_v37 = vpop.f32.mrf.mxu2  ;;  %v1099_v38 = vpop.f32.mrf.mxu3 }
 0x343   : > { %v1080_v39 = vadd.f32 %v1079_v37, %v1057_v32  ;;  %v1100_v40 = vadd.f32 %v1099_v38, %v1057_v32 }
 0x345   : > { %v1102_v20 = vmax.f32 %v1080_v39, 0.0  ;;  %v1103_v42 = vmax.f32 %v1100_v40, 0.0 }
 0x347   : > { %v1104_v43 = vadd.f32 %v1427_v53, %v1102_v20  ;;  %v1105_v44 = vadd.f32 %v1430_v54, %v1103_v42 }
 0x349   : > { %1216 = vst [vmem:[%s1538_s19 + $0x10] sm:$0xff] %v1104_v43 }
 0x34a   : > { %1217 = vst [vmem:[%s1538_s19 + $0x18] sm:$0xff] %v1105_v44 }
 0x34b PF: > { %s18_s27 = sadd.s32 1, %s1244_s27  }
 0x34c   : > { %p15_p4 = scmp.ge.s32.totalorder %s18_s27, 4  }
 0x34e   :  { %17 = sbr.rel (!%p15_p4) target bundleno = 1 (0x1), region = 88 }

</bundles_post_ra>
